<compile_context>
chip_gen: v6e
topology: v6e:2x2x1
jax: 0.10.0
libtpu: 0.0.40
codegen_flags: <defaults>
</compile_context>

<pallas_src>
import functools

import jax
import jax.numpy as jnp
from jax.experimental import pallas as pl
from jax.experimental.pallas import tpu as pltpu


def policy_net_kernel(x_ref, w1_ref, b1_ref, w2_ref, b2_ref, o_ref):
    # fc1 + ReLU: bf16 MXU inputs, f32 accumulation, f32 elementwise.
    h = jnp.dot(x_ref[...], w1_ref[...], preferred_element_type=jnp.float32)
    h = jnp.maximum(h + b1_ref[...], 0.0)

    # fc2: hidden padding lanes of h are exactly 0 and the padded w2 rows are 0,
    # so they contribute nothing to the logits.
    logits = jnp.dot(h.astype(w2_ref.dtype), w2_ref[...],
                     preferred_element_type=jnp.float32) + b2_ref[...]

    # Numerically stable, exact softmax over the action dimension (dim=1), all f32.
    m = jnp.max(logits, axis=1, keepdims=True)
    e = jnp.exp(logits - m)
    o_ref[...] = e / jnp.sum(e, axis=1, keepdims=True)


def _round_up(n, m):
    return (n + m - 1) // m * m


def prepare_params(w1, b1, w2, b2, *, matmul_dtype=jnp.bfloat16):
    """One-time parameter prep (hoisted out of the per-call path).

    Pads only the hidden dim to 128 (MXU/lane friendly for the resident weights and
    the intermediate activation); state and action dims stay at their real sizes so
    the streamed x / output tensors carry no padding.  Weights are cast to bf16 for
    the MXU; biases stay f32 (added after the f32 accumulation).
    """
    state_dim, hidden_dim = w1.shape
    action_dim = w2.shape[1]
    hp = _round_up(hidden_dim, 128)

    w1p = jnp.zeros((state_dim, hp), matmul_dtype).at[:, :hidden_dim].set(
        w1.astype(matmul_dtype))
    b1p = jnp.zeros((1, hp), jnp.float32).at[:, :hidden_dim].set(
        b1.astype(jnp.float32).reshape(1, hidden_dim))
    w2p = jnp.zeros((hp, action_dim), matmul_dtype).at[:hidden_dim, :].set(
        w2.astype(matmul_dtype))
    b2p = b2.astype(jnp.float32).reshape(1, action_dim)
    return w1p, b1p, w2p, b2p


@functools.partial(jax.jit, static_argnames=("max_batch_tile",))
def policy_net_forward(x, w1p, b1p, w2p, b2p, *, max_batch_tile=128):
    """x: (B, state_dim) f32; params from `prepare_params`. Returns (B, action_dim) probs."""
    batch, state_dim = x.shape
    hp = w1p.shape[1]
    action_dim = w2p.shape[1]

    # Batch tile: multiple of 16 (bf16 sublane packing), capped at max_batch_tile so
    # large batches produce >= 2 grid steps (v7x dual-TC), and sized to minimize tail
    # padding (e.g. batch=300 -> 3 tiles of 112 rows, not 2x256).
    n_tiles = max(1, pl.cdiv(batch, max_batch_tile))
    tb = _round_up(pl.cdiv(batch, n_tiles), 16)
    bp = _round_up(batch, tb)

    xp = x.astype(w1p.dtype)
    if bp != batch:
        xp = jnp.zeros((bp, state_dim), w1p.dtype).at[:batch].set(xp)

    out = pl.pallas_call(
        policy_net_kernel,
        out_shape=jax.ShapeDtypeStruct((bp, action_dim), jnp.float32),
        grid=(bp // tb,),
        in_specs=[
            # x streamed over the batch, feature dim unpadded (full-dim block).
            pl.BlockSpec((tb, state_dim), lambda i: (i, 0)),
            # Weights / biases: constant index_map -> VMEM-resident across the grid.
            # (If this net is ever scaled up, consider pipeline_mode=pl.Buffered(1)
            #  here for v7x's smaller 64 MiB VMEM; at these sizes it is irrelevant.)
            pl.BlockSpec((state_dim, hp), lambda i: (0, 0)),
            pl.BlockSpec((1, hp), lambda i: (0, 0)),
            pl.BlockSpec((hp, action_dim), lambda i: (0, 0)),
            pl.BlockSpec((1, action_dim), lambda i: (0, 0)),
        ],
        # Output keeps the real action dim -> no 16x padded store traffic, no slice copy.
        out_specs=pl.BlockSpec((tb, action_dim), lambda i: (i, 0)),
        compiler_params=pltpu.CompilerParams(
            dimension_semantics=("parallel",),
        ),
    )(xp, w1p, b1p, w2p, b2p)

    return out[:batch] if bp != batch else out


def init_params(key, state_dim, hidden_dim, action_dim):
    # Deterministic synthetic init (mimics torch.nn.Linear uniform(-1/sqrt(fan_in), ...)).
    # Weights are stored pre-transposed as (in_features, out_features).
    k1, k2, k3, k4 = jax.random.split(key, 4)
    bound1 = 1.0 / jnp.sqrt(state_dim)
    bound2 = 1.0 / jnp.sqrt(hidden_dim)
    w1 = jax.random.uniform(k1, (state_dim, hidden_dim), jnp.float32, -bound1, bound1)
    b1 = jax.random.uniform(k2, (1, hidden_dim), jnp.float32, -bound1, bound1)
    w2 = jax.random.uniform(k3, (hidden_dim, action_dim), jnp.float32, -bound2, bound2)
    b2 = jax.random.uniform(k4, (1, action_dim), jnp.float32, -bound2, bound2)
    return w1, b1, w2, b2


if __name__ == "__main__":
    state_dim, hidden_dim, action_dim = 16, 32, 8
    batch = 2

    key = jax.random.PRNGKey(0)
    kx, kp_ = jax.random.split(key)
    x = jax.random.normal(kx, (batch, state_dim), jnp.float32)
    w1, b1, w2, b2 = init_params(kp_, state_dim, hidden_dim, action_dim)

    # One-time parameter padding/cast (outside the per-call path).
    params = prepare_params(w1, b1, w2, b2)

    out = policy_net_forward(x, *params)
    out = jax.block_until_ready(out)

    # Pure-JAX f32 reference (PyTorch semantics). Tolerance covers bf16 MXU inputs.
    h_ref = jnp.maximum(x @ w1 + b1, 0.0)
    probs_ref = jax.nn.softmax(h_ref @ w2 + b2, axis=1)
    assert out.shape == (batch, action_dim), "wrong output shape"
    assert jnp.allclose(out, probs_ref, atol=1e-2), "mismatch vs reference"
    assert jnp.allclose(jnp.sum(out, axis=1), 1.0, atol=1e-5), "rows must sum to 1"

    print("KERNEL_OK")
</pallas_src>

<mosaic_0001>
module attributes {stable_mosaic.version = 11 : i64} {
  func.func @policy_net_kernel(%arg0: i32, %arg1: memref<16x16xbf16, #tpu.memory_space<vmem>>, %arg2: memref<16x128xbf16, #tpu.memory_space<vmem>>, %arg3: memref<1x128xf32, #tpu.memory_space<vmem>>, %arg4: memref<128x8xbf16, #tpu.memory_space<vmem>>, %arg5: memref<1x8xf32, #tpu.memory_space<vmem>>, %arg6: memref<16x8xf32, #tpu.memory_space<vmem>>) attributes {dimension_semantics = [#tpu.dimension_semantics<parallel>], iteration_bounds = array<i64: 1>, scalar_prefetch = 0 : i64, scratch_operands = 0 : i64, tpu.core_type = #tpu.core_type<tc>, window_params = [{transform_indices = @transform_0, window_bounds = array<i64: 16, 16>}, {pipeline_mode = #tpu.pipeline_mode<synchronous>, transform_indices = @transform_1, window_bounds = array<i64: 16, 128>}, {pipeline_mode = #tpu.pipeline_mode<synchronous>, transform_indices = @transform_2, window_bounds = array<i64: 1, 128>}, {pipeline_mode = #tpu.pipeline_mode<synchronous>, transform_indices = @transform_3, window_bounds = array<i64: 128, 8>}, {pipeline_mode = #tpu.pipeline_mode<synchronous>, transform_indices = @transform_4, window_bounds = array<i64: 1, 8>}, {transform_indices = @transform_5, window_bounds = array<i64: 16, 8>}]} {
    %c0 = arith.constant 0 : index
    %c0_0 = arith.constant 0 : index
    %0 = vector.load %arg1[%c0, %c0_0] : memref<16x16xbf16, #tpu.memory_space<vmem>>, vector<16x16xbf16>
    %c0_1 = arith.constant 0 : index
    %c0_2 = arith.constant 0 : index
    %1 = vector.load %arg2[%c0_1, %c0_2] : memref<16x128xbf16, #tpu.memory_space<vmem>>, vector<16x128xbf16>
    %cst = arith.constant dense<0.000000e+00> : vector<16x128xf32>
    %2 = tpu.matmul %0, %1, %cst {dimension_numbers = #tpu.dot_dimension_numbers<[1], [0], [0], [1], [0, 0, 1, 1], [], []>} : vector<16x16xbf16>, vector<16x128xbf16>, vector<16x128xf32> -> vector<16x128xf32>
    %c0_3 = arith.constant 0 : index
    %c0_4 = arith.constant 0 : index
    %3 = vector.load %arg3[%c0_3, %c0_4] : memref<1x128xf32, #tpu.memory_space<vmem>>, vector<1x128xf32>
    %4 = vector.broadcast %3 : vector<1x128xf32> to vector<16x128xf32>
    %5 = arith.addf %2, %4 : vector<16x128xf32>
    %cst_5 = arith.constant 0.000000e+00 : f32
    %6 = vector.broadcast %cst_5 : f32 to vector<16x128xf32>
    %7 = arith.maximumf %5, %6 : vector<16x128xf32>
    %8 = arith.truncf %7 : vector<16x128xf32> to vector<16x128xbf16>
    %c0_6 = arith.constant 0 : index
    %c0_7 = arith.constant 0 : index
    %9 = vector.load %arg4[%c0_6, %c0_7] : memref<128x8xbf16, #tpu.memory_space<vmem>>, vector<128x8xbf16>
    %cst_8 = arith.constant dense<0.000000e+00> : vector<16x8xf32>
    %10 = tpu.matmul %8, %9, %cst_8 {dimension_numbers = #tpu.dot_dimension_numbers<[1], [0], [0], [1], [0, 0, 1, 1], [], []>} : vector<16x128xbf16>, vector<128x8xbf16>, vector<16x8xf32> -> vector<16x8xf32>
    %c0_9 = arith.constant 0 : index
    %c0_10 = arith.constant 0 : index
    %11 = vector.load %arg5[%c0_9, %c0_10] : memref<1x8xf32, #tpu.memory_space<vmem>>, vector<1x8xf32>
    %12 = vector.broadcast %11 : vector<1x8xf32> to vector<16x8xf32>
    %13 = arith.addf %10, %12 : vector<16x8xf32>
    %cst_11 = arith.constant dense<0xFF800000> : vector<16xf32>
    %14 = vector.multi_reduction <maximumf>, %13, %cst_11 [1] : vector<16x8xf32> to vector<16xf32>
    %15 = vector.shape_cast %14 : vector<16xf32> to vector<16x1xf32>
    %16 = vector.broadcast %15 : vector<16x1xf32> to vector<16x8xf32>
    %17 = arith.subf %13, %16 : vector<16x8xf32>
    %18 = math.exp %17 : vector<16x8xf32>
    %cst_12 = arith.constant dense<0.000000e+00> : vector<16xf32>
    %19 = vector.multi_reduction <add>, %18, %cst_12 [1] : vector<16x8xf32> to vector<16xf32>
    %20 = vector.shape_cast %19 : vector<16xf32> to vector<16x1xf32>
    %21 = vector.broadcast %20 : vector<16x1xf32> to vector<16x8xf32>
    %22 = arith.divf %18, %21 : vector<16x8xf32>
    %c0_13 = arith.constant 0 : index
    %c0_14 = arith.constant 0 : index
    %23 = vector.load %arg6[%c0_13, %c0_14] : memref<16x8xf32, #tpu.memory_space<vmem>>, vector<16x8xf32>
    tpu.vector_store %arg6[%c0_13, %c0_14], %22 {strides = array<i32>} : memref<16x8xf32, #tpu.memory_space<vmem>>, vector<16x8xf32>,
    return
  }
  func.func @transform_0(%arg0: i32) -> (i32, i32) {
    %c0_i32 = arith.constant 0 : i32
    %c0_i32_0 = arith.constant 0 : i32
    return %arg0, %c0_i32 : i32, i32
  }
  func.func @transform_1(%arg0: i32) -> (i32, i32) {
    %c0_i32 = arith.constant 0 : i32
    %c0_i32_0 = arith.constant 0 : i32
    %c0_i32_1 = arith.constant 0 : i32
    return %c0_i32, %c0_i32_0 : i32, i32
  }
  func.func @transform_2(%arg0: i32) -> (i32, i32) {
    %c0_i32 = arith.constant 0 : i32
    %c0_i32_0 = arith.constant 0 : i32
    %c0_i32_1 = arith.constant 0 : i32
    return %c0_i32, %c0_i32_0 : i32, i32
  }
  func.func @transform_3(%arg0: i32) -> (i32, i32) {
    %c0_i32 = arith.constant 0 : i32
    %c0_i32_0 = arith.constant 0 : i32
    %c0_i32_1 = arith.constant 0 : i32
    return %c0_i32, %c0_i32_0 : i32, i32
  }
  func.func @transform_4(%arg0: i32) -> (i32, i32) {
    %c0_i32 = arith.constant 0 : i32
    %c0_i32_0 = arith.constant 0 : i32
    %c0_i32_1 = arith.constant 0 : i32
    return %c0_i32, %c0_i32_0 : i32, i32
  }
  func.func @transform_5(%arg0: i32) -> (i32, i32) {
    %c0_i32 = arith.constant 0 : i32
    %c0_i32_0 = arith.constant 0 : i32
    return %arg0, %c0_i32 : i32, i32
  }
}

</mosaic_0001>

<bundles_post_ra>
// kernel: policy_net_forward.1
= control target key start
LH: loop header
LB: loop body
LE: loop exit
PB: predicated region body
PF: predicated region fallthrough
CT: control target
= control target key end

     0   :  { %v302_v0 = vmov 0.0   ;;  %vm303_vm0 = vmmov 0   ;;  %vm43_vm1 = vcmask 130048   ;;  %vm203_vm2 = vcmask 64512   ;;  %s382_s1 = inlined_call_operand.vmem [shape: bf16[16,128], index: 1, kind: input, shape index: {}]   ;;  %s383_s0 = inlined_call_operand.vmem [shape: bf16[16,16], index: 0, kind: input, shape index: {}]   ;;  %s384_s3 = inlined_call_operand.vmem [shape: bf16[128,8], index: 3, kind: input, shape index: {}]   ;;  %s385_s2 = inlined_call_operand.vmem [shape: f32[1,128], index: 2, kind: input, shape index: {}]   ;;  %s386_s4 = inlined_call_operand.vmem [shape: f32[1,8], index: 4, kind: input, shape index: {}]   ;;  %s387_s5 = inlined_call_operand.vmem [shape: f32[16,8], index: 5, kind: output, shape index: {}]  }
   0x1   :  { %256 = vmatprep.subr.bf16.mxu0 %v302_v0  ;;  %v284_v1 = vld [vmem:[%s382_s1] sm:$0xff]   ;;  %258 = vmatprep.mubr.msk.bf16.mxu0 %vm303_vm0, %v302_v0  ;;  %v286_v3 = vld [vmem:[%s384_s3 + $0x38] sm:$0xff]   ;;  %v287_v4 = vld [vmem:[%s384_s3 + $0x30] sm:$0xff]  }
   0x2   :  { %v285_v2 = vld [vmem:[%s383_s0] sm:$0xff]   ;;  %262 = vmatprep.subr.bf16.mxu1 %v302_v0  ;;  %278 = vmatprep.mubr.msk.bf16.mxu1 %vm303_vm0, %v302_v0  ;;  %v288_v5 = vld [vmem:[%s384_s3 + $0x28] sm:$0xff]   ;;  %v290_v7 = vld [vmem:[%s384_s3 + $0x18] sm:$0xff]  }
   0x3   :  { %257 = vmatpush3.bf16.msra.mxu0 %v284_v1  ;;  %263 = vmatpush3.bf16.msra.mxu1 %v286_v3  ;;  %v289_v6 = vld [vmem:[%s384_s3 + $0x20] sm:$0xff]   ;;  %v291_v8 = vld [vmem:[%s384_s3 + $0x10] sm:$0xff]   ;;  %v292_v9 = vld [vmem:[%s384_s3 + $0x8] sm:$0xff]  }
   0x4   :  { %264 = vmatprep.subr.bf16.mxu1 %v302_v0  ;;  %v293_v10 = vld [vmem:[%s384_s3] sm:$0xff]  }
   0x5   :  { %v232_v11 = vld [vmem:[%s385_s2] ss:$0 sm:$0xff] }
   0x6   :  { %259 = vmatmul.mubr.msk.bf16.vlgmr.msra.gmra.mxu0 %vm43_vm1, %v285_v2  ;;  %v236_v21 = vld [vmem:[%s386_s4] ss:$0 sm:$0xff] }
   0x7   :  { %265 = vmatpush3.bf16.msra.mxu1 %v287_v4 }
   0x8   :  { %266 = vmatprep.subr.bf16.mxu1 %v302_v0 }
   0xb   :  { %267 = vmatpush3.bf16.msra.mxu1 %v288_v5 }
   0xc   :  { %268 = vmatprep.subr.bf16.mxu1 %v302_v0 }
   0xf   :  { %269 = vmatpush3.bf16.msra.mxu1 %v289_v6 }
  0x10   :  { %270 = vmatprep.subr.bf16.mxu1 %v302_v0 }
  0x13   :  { %271 = vmatpush3.bf16.msra.mxu1 %v290_v7 }
  0x14   :  { %272 = vmatprep.subr.bf16.mxu1 %v302_v0 }
  0x17   :  { %273 = vmatpush3.bf16.msra.mxu1 %v291_v8 }
  0x18   :  { %274 = vmatprep.subr.bf16.mxu1 %v302_v0 }
  0x1b   :  { %275 = vmatpush3.bf16.msra.mxu1 %v292_v9 }
  0x1c   :  { %276 = vmatprep.subr.bf16.mxu1 %v302_v0 }
  0x1f   :  { %277 = vmatpush3.bf16.msra.mxu1 %v293_v10 }
  0xc6   :  { %v81_v12 = vpop.f32.mrf.mxu0 }
  0xc7   :  { %v82_v14 = vadd.f32 %v232_v11, %v81_v12 }
  0xc8   :  { %v260_v13 = vpop.f32.mrf.mxu0 }
  0xc9   :  { %v88_v18 = vmax.f32 %v82_v14, 0.0 }
  0xca   :  { %v84_v15 = vpop.f32.mrf.mxu0 }
  0xcb   :  { %v85_v16 = vadd.f32 %v232_v11, %v84_v15 }
  0xcc   :  { %v261_v17 = vpop.f32.mrf.mxu0 }
  0xcd   :  { %v89_v19 = vmax.f32 %v85_v16, 0.0 }
  0xcf   :  { %v90_v20 = vpack.c.bf16 %v89_v19, %v88_v18 }
  0xd1   :  { %279 = vmatmul.mubr.bf16.vlgmr.msra.gmra.mxu1 %v90_v20 }
 0x191   :  { %v196_v22 = vpop.f32.mrf.mxu1 }
 0x192   :  { %v197_v23 = vadd.f32 %v236_v21, %v196_v22 }
 0x193   :  { %v280_v24 = vpop.f32.mrf.mxu1 }
 0x194   :  { %v204_v25 = vsel %vm203_vm2, %v197_v23, -inf }
 0x195   :  { %205 = vmax.xlane.f32.xlu0 %v204_v25  ;;  %v199_v26 = vpop.f32.mrf.mxu1 }
 0x196   :  { %v200_v27 = vadd.f32 %v236_v21, %v199_v26 }
 0x197   :  { %v281_v28 = vpop.f32.mrf.mxu1 }
 0x198   :  { %v207_v29 = vsel %vm203_vm2, %v200_v27, -inf }
 0x199   :  { %208 = vmax.xlane.f32.xlu0 %v207_v29 }
 0x21e   :  { %v206_v30 = vpop.xlane.xlu0 %205 }
 0x21f   :  { %v210_v31 = vsub.f32 %v197_v23, %v206_v30 }
 0x221   :  { %v212_v32 = vmul.f32 1.442695, %v210_v31 }
 0x222   :  { %v209_v33 = vpop.xlane.xlu0 %208 }
 0x223   :  { %294 = vpow2.f32 %v212_v32  ;;  %v211_v34 = vsub.f32 %v200_v27, %v209_v33 }
 0x225   :  { %v214_v35 = vmul.f32 1.442695, %v211_v34 }
 0x227   :  { %296 = vpow2.f32 %v214_v35 }
 0x230   :  { %v295_v36 = vpop.eup %294 }
 0x231   :  { %v216_v37 = vsel %vm203_vm2, %v295_v36, 0.0 }
 0x232   :  { %217 = vadd.xlane.f32.xlu1 %v216_v37 }
 0x234   :  { %v297_v38 = vpop.eup %296 }
 0x235   :  { %v219_v39 = vsel %vm203_vm2, %v297_v38, 0.0 }
 0x236   :  { %220 = vadd.xlane.f32.xlu1 %v219_v39 }
 0x2bb   :  { %v218_v40 = vpop.xlane.xlu1 %217 }
 0x2bc   :  { %298 = vrcp.f32 %v218_v40 }
 0x2bf   :  { %v221_v41 = vpop.xlane.xlu1 %220 }
 0x2c0   :  { %300 = vrcp.f32 %v221_v41 }
 0x2c9   :  { %v299_v42 = vpop.eup %298 }
 0x2ca   :  { %v223_v43 = vmul.f32 %v299_v42, %v295_v36 }
 0x2cc   :  { %226 = vst.msk [vmem:[%s387_s5] sm:$0xff] %vm203_vm2, %v223_v43 }
 0x2cd   :  { %v301_v44 = vpop.eup %300 }
 0x2ce   :  { %v225_v45 = vmul.f32 %v301_v44, %v297_v38 }
 0x2d0   :  { %227 = vst.msk [vmem:[%s387_s5 + $0x8] sm:$0xff] %vm203_vm2, %v225_v45 }

</bundles_post_ra>
